<compile_context>
chip_gen: v7x
topology: tpu7x:2x2x1
jax: 0.10.0
libtpu: 0.0.40
codegen_flags: <defaults>
</compile_context>

<pallas_src>
import jax
import jax.numpy as jnp
from jax.experimental import pallas as pl
from jax.experimental.pallas import tpu as pltpu


# ---------------------------------------------------------------------------
# Fused Pallas kernel: ext-conv + (conv1 -> GELU -> conv2) + residual add
# ---------------------------------------------------------------------------
def _make_fused_kernel(B, H, W):
    """Kernel for a (B, H, W) batch block; writes (B, H-1, 2W) packed output."""

    def lane_shifts(a):
        # (left, center, right): left[..., w] = a[..., w-1] (zero at w=0),
        # right[..., w] = a[..., w+1] (zero at w=W-1).  Two small lane concats;
        # all three views live in registers and are reused by every tap set.
        z = jnp.zeros(a.shape[:-1] + (1,), a.dtype)
        return (jnp.concatenate([z, a[..., :-1]], axis=-1),
                a,
                jnp.concatenate([a[..., 1:], z], axis=-1))

    def lin3(s, t0, t1, t2):
        return s[0] * t0 + s[1] * t1 + s[2] * t2

    def gelu(v):  # exact erf GELU == torch.nn.GELU() default
        return 0.5 * v * (1.0 + jax.lax.erf(v * 0.7071067811865476))

    def kernel(x_ref, w_ref, b_ref, o_ref):
        x = x_ref[...].astype(jnp.float32)                  # (B, H, W)

        # Scalar taps (W-flipped kernels), each read once from 1-D SMEM.
        w1 = [w_ref[k] for k in range(9)]                   # block[0]
        we = [w_ref[9 + k] for k in range(9)]                # ext_block[0]
        w2 = [w_ref[18 + k] for k in range(9)]               # block[2]
        b1, be, b2 = b_ref[0], b_ref[1], b_ref[2]

        # ---- lane-shifted views of x, computed once, shared by w1 and we ----
        xl, xc, xr = lane_shifts(x)
        top = (xl[:, :H - 1], xc[:, :H - 1], xr[:, :H - 1])   # rows r
        bot = (xl[:, 1:],     xc[:, 1:],     xr[:, 1:])       # rows r+1
        mid = (xl[:, 1:H - 1], xc[:, 1:H - 1], xr[:, 1:H - 1])

        # ---- stride-(2,1), pad-(2,1) transposed convs, implicit dilation ----
        h_even = (b1 + lin3(top, w1[6], w1[7], w1[8])
                     + lin3(bot, w1[0], w1[1], w1[2]))        # (B, H-1, W)
        h_odd = b1 + lin3(mid, w1[3], w1[4], w1[5])           # (B, H-2, W)
        e_even = (be + lin3(top, we[6], we[7], we[8])
                     + lin3(bot, we[0], we[1], we[2]))        # (B, H-1, W)
        e_odd = be + lin3(mid, we[3], we[4], we[5])           # (B, H-2, W)

        h_even = gelu(h_even)
        h_odd = gelu(h_odd)

        # ---- zero-bordered GELU(h) planes built in registers (no scratch) ---
        zrow = jnp.zeros((B, 1, W), jnp.float32)
        h_odd_p = jnp.concatenate([zrow, h_odd, zrow], axis=1)   # (B, H, W)
        el, ec, er = lane_shifts(h_even)                      # (B, H-1, W)
        ol, oc, og = lane_shifts(h_odd_p)                     # (B, H,   W)

        # ---- stride-1, pad-1 transposed conv + residual add -----------------
        # even out rows 2r  : h[2r+1]*w2[0,:] + h[2r]*w2[1,:] + h[2r-1]*w2[2,:]
        oe = (b2
              + (ol[:, 1:] * w2[0] + oc[:, 1:] * w2[1] + og[:, 1:] * w2[2])
              + (el * w2[3] + ec * w2[4] + er * w2[5])
              + (ol[:, :H - 1] * w2[6] + oc[:, :H - 1] * w2[7]
                 + og[:, :H - 1] * w2[8])
              + e_even)                                       # (B, H-1, W)
        # odd out rows 2r+1: h[2r+2]*w2[0,:] + h[2r+1]*w2[1,:] + h[2r]*w2[2,:]
        oo = (b2
              + (el[:, 1:H - 1] * w2[0] + ec[:, 1:H - 1] * w2[1]
                 + er[:, 1:H - 1] * w2[2])
              + (ol[:, 1:H - 1] * w2[3] + oc[:, 1:H - 1] * w2[4]
                 + og[:, 1:H - 1] * w2[5])
              + (el[:, :H - 2] * w2[6] + ec[:, :H - 2] * w2[7]
                 + er[:, :H - 2] * w2[8])
              + e_odd)                                        # (B, H-2, W)

        # Pack [even | odd(+1 zero row)] along lanes -> ONE full store.  The
        # wrapper's free reshape (B,H-1,2W)->(B,2H-2,W) interleaves the rows.
        oo_p = jnp.concatenate([oo, zrow], axis=1)            # (B, H-1, W)
        o_ref[...] = jnp.concatenate([oe, oo_p], axis=-1).astype(o_ref.dtype)

    return kernel


# ---------------------------------------------------------------------------
# Wrapper
# ---------------------------------------------------------------------------
def _pack_params(params):
    def wflip(wk):                    # (1,1,3,3) -> W-flipped (3,3) -> (9,)
        return wk[0, 0, :, ::-1].reshape(9)

    w_all = jnp.concatenate(
        [wflip(params["w1"]), wflip(params["we"]), wflip(params["w2"])]
    ).astype(jnp.float32)                                     # (27,) SMEM taps
    b_all = jnp.concatenate(
        [params["b1"], params["be"], params["b2"]]).astype(jnp.float32)  # (3,)
    return w_all, b_all


def _pick_batch_block(n, h, w):
    """Largest divisor of n whose per-step working set stays well under VMEM.

    ~16 live f32 planes of (h, w) per image plus the double-buffered in/out
    blocks; budget ~6 MiB per step so it fits every generation's scoped VMEM
    default (and v7x's 64 MiB total) with headroom.
    """
    per_img_bytes = 16 * 4 * h * (w + 2)
    b = max(1, min(n, (6 << 20) // max(per_img_bytes, 1)))
    while n % b:
        b -= 1
    return b


@jax.jit
def residual_block(x_nchw, params):
    # x_nchw: (N, 1, H, W) float32
    n = x_nchw.shape[0]
    h, w = x_nchw.shape[2], x_nchw.shape[3]
    assert h >= 3 and w >= 3, "ResidualBlock kernel assumes H >= 3 and W >= 3"
    ho = 2 * h - 3

    x = x_nchw.reshape(n, h, w).astype(jnp.float32)           # free reshape
    w_all, b_all = _pack_params(params)

    b_blk = _pick_batch_block(n, h, w)
    kernel = _make_fused_kernel(b_blk, h, w)

    packed = pl.pallas_call(
        kernel,
        out_shape=jax.ShapeDtypeStruct((n, h - 1, 2 * w), jnp.float32),
        grid=(n // b_blk,),
        in_specs=[
            pl.BlockSpec((b_blk, h, w), lambda i: (i, 0, 0)),
            pl.BlockSpec(memory_space=pltpu.MemorySpace.SMEM),   # (27,) taps
            pl.BlockSpec(memory_space=pltpu.MemorySpace.SMEM),   # (3,) biases
        ],
        out_specs=pl.BlockSpec((b_blk, h - 1, 2 * w), lambda i: (i, 0, 0)),
        compiler_params=pltpu.CompilerParams(
            dimension_semantics=("parallel",)),
    )(x, w_all, b_all)

    # (N, H-1, 2W) --free reshape--> (N, 2H-2, W): row 2r = even plane row r,
    # row 2r+1 = odd plane row r.  Drop the single zero pad row 2H-3.
    out = packed.reshape(n, 2 * (h - 1), w)[:, :ho]
    return out[:, None, :, :]                                  # (N, 1, 2H-3, W)


# ---------------------------------------------------------------------------
# Pure-JAX reference (explicit dilate + pad + flipped-kernel correlation)
# ---------------------------------------------------------------------------
def _conv_transpose_ref(x, wk, b, stride, padding):
    sh, sw = stride
    ph, pw = padding
    n, h, wd = x.shape
    xd = jnp.zeros((n, (h - 1) * sh + 1, (wd - 1) * sw + 1), x.dtype)
    xd = xd.at[:, ::sh, ::sw].set(x)
    xdp = jnp.pad(xd, ((0, 0), (2 - ph, 2 - ph), (2 - pw, 2 - pw)))
    wf = wk[0, 0, ::-1, ::-1]
    ho, wo = xdp.shape[1] - 2, xdp.shape[2] - 2
    out = jnp.zeros((n, ho, wo), jnp.float32) + b[0]
    for i in range(3):
        for j in range(3):
            out = out + xdp[:, i:i + ho, j:j + wo] * wf[i, j]
    return out


def residual_block_ref(x_nchw, params):
    x = x_nchw[:, 0]
    ext = _conv_transpose_ref(x, params["we"], params["be"], (2, 1), (2, 1))
    h1 = _conv_transpose_ref(x, params["w1"], params["b1"], (2, 1), (2, 1))
    h1 = 0.5 * h1 * (1.0 + jax.lax.erf(h1 * 0.7071067811865476))
    out = _conv_transpose_ref(h1, params["w2"], params["b2"], (1, 1), (1, 1))
    return (out + ext)[:, None]


# ---------------------------------------------------------------------------
# Params (same shapes as the PyTorch module)
# ---------------------------------------------------------------------------
def init_params(key):
    ks = jax.random.split(key, 6)
    bound = 1.0 / 3.0  # 1/sqrt(in_ch * kH * kW), like PyTorch default
    u = lambda k, shape: jax.random.uniform(k, shape, jnp.float32,
                                            -bound, bound)
    return {
        "w1": u(ks[0], (1, 1, 3, 3)), "b1": u(ks[1], (1,)),   # block[0]
        "w2": u(ks[2], (1, 1, 3, 3)), "b2": u(ks[3], (1,)),   # block[2]
        "we": u(ks[4], (1, 1, 3, 3)), "be": u(ks[5], (1,)),   # ext_block[0]
    }


if __name__ == "__main__":
    key = jax.random.PRNGKey(0)
    k_param, k_x = jax.random.split(key)
    params = init_params(k_param)

    N, C, H, W = 2, 1, 16, 16   # module fixes C=1
    x = jax.random.normal(k_x, (N, C, H, W), dtype=jnp.float32)

    y = residual_block(x, params)
    jax.block_until_ready(y)

    expected_shape = (N, 1, 2 * H - 3, W)
    assert y.shape == expected_shape, (y.shape, expected_shape)

    y_ref = residual_block_ref(x, params)
    max_err = float(jnp.max(jnp.abs(y - y_ref)))
    assert jnp.allclose(y, y_ref, atol=1e-3, rtol=1e-3), max_err

    print("KERNEL_OK")
</pallas_src>

<mosaic_0001>
module attributes {stable_mosaic.version = 11 : i64} {
  func.func @kernel(%arg0: i32, %arg1: memref<2x16x16xf32, #tpu.memory_space<vmem>>, %arg2: memref<27xf32, #tpu.memory_space<smem>>, %arg3: memref<3xf32, #tpu.memory_space<smem>>, %arg4: memref<2x15x32xf32, #tpu.memory_space<vmem>>) attributes {dimension_semantics = [#tpu.dimension_semantics<parallel>], iteration_bounds = array<i64: 1>, scalar_prefetch = 0 : i64, scratch_operands = 0 : i64, tpu.core_type = #tpu.core_type<tc>, window_params = [{transform_indices = @transform_0, window_bounds = array<i64: 2, 16, 16>}, {transform_indices = @transform_1, window_bounds = array<i64: 27>}, {transform_indices = @transform_2, window_bounds = array<i64: 3>}, {transform_indices = @transform_3, window_bounds = array<i64: 2, 15, 32>}]} {
    %c0 = arith.constant 0 : index
    %c0_0 = arith.constant 0 : index
    %c0_1 = arith.constant 0 : index
    %0 = vector.load %arg1[%c0, %c0_0, %c0_1] : memref<2x16x16xf32, #tpu.memory_space<vmem>>, vector<2x16x16xf32>
    %c0_2 = arith.constant 0 : index
    %1 = memref.load %arg2[%c0_2] : memref<27xf32, #tpu.memory_space<smem>>
    %c1 = arith.constant 1 : index
    %2 = memref.load %arg2[%c1] : memref<27xf32, #tpu.memory_space<smem>>
    %c2 = arith.constant 2 : index
    %3 = memref.load %arg2[%c2] : memref<27xf32, #tpu.memory_space<smem>>
    %c3 = arith.constant 3 : index
    %4 = memref.load %arg2[%c3] : memref<27xf32, #tpu.memory_space<smem>>
    %c4 = arith.constant 4 : index
    %5 = memref.load %arg2[%c4] : memref<27xf32, #tpu.memory_space<smem>>
    %c5 = arith.constant 5 : index
    %6 = memref.load %arg2[%c5] : memref<27xf32, #tpu.memory_space<smem>>
    %c6 = arith.constant 6 : index
    %7 = memref.load %arg2[%c6] : memref<27xf32, #tpu.memory_space<smem>>
    %c7 = arith.constant 7 : index
    %8 = memref.load %arg2[%c7] : memref<27xf32, #tpu.memory_space<smem>>
    %c8 = arith.constant 8 : index
    %9 = memref.load %arg2[%c8] : memref<27xf32, #tpu.memory_space<smem>>
    %c9 = arith.constant 9 : index
    %10 = memref.load %arg2[%c9] : memref<27xf32, #tpu.memory_space<smem>>
    %c10 = arith.constant 10 : index
    %11 = memref.load %arg2[%c10] : memref<27xf32, #tpu.memory_space<smem>>
    %c11 = arith.constant 11 : index
    %12 = memref.load %arg2[%c11] : memref<27xf32, #tpu.memory_space<smem>>
    %c12 = arith.constant 12 : index
    %13 = memref.load %arg2[%c12] : memref<27xf32, #tpu.memory_space<smem>>
    %c13 = arith.constant 13 : index
    %14 = memref.load %arg2[%c13] : memref<27xf32, #tpu.memory_space<smem>>
    %c14 = arith.constant 14 : index
    %15 = memref.load %arg2[%c14] : memref<27xf32, #tpu.memory_space<smem>>
    %c15 = arith.constant 15 : index
    %16 = memref.load %arg2[%c15] : memref<27xf32, #tpu.memory_space<smem>>
    %c16 = arith.constant 16 : index
    %17 = memref.load %arg2[%c16] : memref<27xf32, #tpu.memory_space<smem>>
    %c17 = arith.constant 17 : index
    %18 = memref.load %arg2[%c17] : memref<27xf32, #tpu.memory_space<smem>>
    %c18 = arith.constant 18 : index
    %19 = memref.load %arg2[%c18] : memref<27xf32, #tpu.memory_space<smem>>
    %c19 = arith.constant 19 : index
    %20 = memref.load %arg2[%c19] : memref<27xf32, #tpu.memory_space<smem>>
    %c20 = arith.constant 20 : index
    %21 = memref.load %arg2[%c20] : memref<27xf32, #tpu.memory_space<smem>>
    %c21 = arith.constant 21 : index
    %22 = memref.load %arg2[%c21] : memref<27xf32, #tpu.memory_space<smem>>
    %c22 = arith.constant 22 : index
    %23 = memref.load %arg2[%c22] : memref<27xf32, #tpu.memory_space<smem>>
    %c23 = arith.constant 23 : index
    %24 = memref.load %arg2[%c23] : memref<27xf32, #tpu.memory_space<smem>>
    %c24 = arith.constant 24 : index
    %25 = memref.load %arg2[%c24] : memref<27xf32, #tpu.memory_space<smem>>
    %c25 = arith.constant 25 : index
    %26 = memref.load %arg2[%c25] : memref<27xf32, #tpu.memory_space<smem>>
    %c26 = arith.constant 26 : index
    %27 = memref.load %arg2[%c26] : memref<27xf32, #tpu.memory_space<smem>>
    %c0_3 = arith.constant 0 : index
    %28 = memref.load %arg3[%c0_3] : memref<3xf32, #tpu.memory_space<smem>>
    %c1_4 = arith.constant 1 : index
    %29 = memref.load %arg3[%c1_4] : memref<3xf32, #tpu.memory_space<smem>>
    %c2_5 = arith.constant 2 : index
    %30 = memref.load %arg3[%c2_5] : memref<3xf32, #tpu.memory_space<smem>>
    %cst = arith.constant 0.000000e+00 : f32
    %31 = vector.broadcast %cst : f32 to vector<2x16x1xf32>
    %32 = vector.extract_strided_slice %0 {offsets = [0, 0, 0], sizes = [2, 16, 15], strides = [1, 1, 1]} : vector<2x16x16xf32> to vector<2x16x15xf32>
    %33 = tpu.concatenate %31, %32 in 2 : vector<2x16x1xf32>, vector<2x16x15xf32> -> vector<2x16x16xf32>
    %34 = vector.extract_strided_slice %0 {offsets = [0, 0, 1], sizes = [2, 16, 15], strides = [1, 1, 1]} : vector<2x16x16xf32> to vector<2x16x15xf32>
    %35 = tpu.concatenate %34, %31 in 2 : vector<2x16x15xf32>, vector<2x16x1xf32> -> vector<2x16x16xf32>
    %36 = vector.extract_strided_slice %33 {offsets = [0, 0, 0], sizes = [2, 15, 16], strides = [1, 1, 1]} : vector<2x16x16xf32> to vector<2x15x16xf32>
    %37 = vector.extract_strided_slice %0 {offsets = [0, 0, 0], sizes = [2, 15, 16], strides = [1, 1, 1]} : vector<2x16x16xf32> to vector<2x15x16xf32>
    %38 = vector.extract_strided_slice %35 {offsets = [0, 0, 0], sizes = [2, 15, 16], strides = [1, 1, 1]} : vector<2x16x16xf32> to vector<2x15x16xf32>
    %39 = vector.extract_strided_slice %33 {offsets = [0, 1, 0], sizes = [2, 15, 16], strides = [1, 1, 1]} : vector<2x16x16xf32> to vector<2x15x16xf32>
    %40 = vector.extract_strided_slice %0 {offsets = [0, 1, 0], sizes = [2, 15, 16], strides = [1, 1, 1]} : vector<2x16x16xf32> to vector<2x15x16xf32>
    %41 = vector.extract_strided_slice %35 {offsets = [0, 1, 0], sizes = [2, 15, 16], strides = [1, 1, 1]} : vector<2x16x16xf32> to vector<2x15x16xf32>
    %42 = vector.extract_strided_slice %33 {offsets = [0, 1, 0], sizes = [2, 14, 16], strides = [1, 1, 1]} : vector<2x16x16xf32> to vector<2x14x16xf32>
    %43 = vector.extract_strided_slice %0 {offsets = [0, 1, 0], sizes = [2, 14, 16], strides = [1, 1, 1]} : vector<2x16x16xf32> to vector<2x14x16xf32>
    %44 = vector.extract_strided_slice %35 {offsets = [0, 1, 0], sizes = [2, 14, 16], strides = [1, 1, 1]} : vector<2x16x16xf32> to vector<2x14x16xf32>
    %45 = vector.broadcast %7 : f32 to vector<2x15x16xf32>
    %46 = arith.mulf %36, %45 : vector<2x15x16xf32>
    %47 = vector.broadcast %8 : f32 to vector<2x15x16xf32>
    %48 = arith.mulf %37, %47 : vector<2x15x16xf32>
    %49 = arith.addf %46, %48 : vector<2x15x16xf32>
    %50 = vector.broadcast %9 : f32 to vector<2x15x16xf32>
    %51 = arith.mulf %38, %50 : vector<2x15x16xf32>
    %52 = arith.addf %49, %51 : vector<2x15x16xf32>
    %53 = vector.broadcast %28 : f32 to vector<2x15x16xf32>
    %54 = arith.addf %53, %52 : vector<2x15x16xf32>
    %55 = vector.broadcast %1 : f32 to vector<2x15x16xf32>
    %56 = arith.mulf %39, %55 : vector<2x15x16xf32>
    %57 = vector.broadcast %2 : f32 to vector<2x15x16xf32>
    %58 = arith.mulf %40, %57 : vector<2x15x16xf32>
    %59 = arith.addf %56, %58 : vector<2x15x16xf32>
    %60 = vector.broadcast %3 : f32 to vector<2x15x16xf32>
    %61 = arith.mulf %41, %60 : vector<2x15x16xf32>
    %62 = arith.addf %59, %61 : vector<2x15x16xf32>
    %63 = arith.addf %54, %62 : vector<2x15x16xf32>
    %64 = vector.broadcast %4 : f32 to vector<2x14x16xf32>
    %65 = arith.mulf %42, %64 : vector<2x14x16xf32>
    %66 = vector.broadcast %5 : f32 to vector<2x14x16xf32>
    %67 = arith.mulf %43, %66 : vector<2x14x16xf32>
    %68 = arith.addf %65, %67 : vector<2x14x16xf32>
    %69 = vector.broadcast %6 : f32 to vector<2x14x16xf32>
    %70 = arith.mulf %44, %69 : vector<2x14x16xf32>
    %71 = arith.addf %68, %70 : vector<2x14x16xf32>
    %72 = vector.broadcast %28 : f32 to vector<2x14x16xf32>
    %73 = arith.addf %72, %71 : vector<2x14x16xf32>
    %74 = vector.broadcast %16 : f32 to vector<2x15x16xf32>
    %75 = arith.mulf %36, %74 : vector<2x15x16xf32>
    %76 = vector.broadcast %17 : f32 to vector<2x15x16xf32>
    %77 = arith.mulf %37, %76 : vector<2x15x16xf32>
    %78 = arith.addf %75, %77 : vector<2x15x16xf32>
    %79 = vector.broadcast %18 : f32 to vector<2x15x16xf32>
    %80 = arith.mulf %38, %79 : vector<2x15x16xf32>
    %81 = arith.addf %78, %80 : vector<2x15x16xf32>
    %82 = vector.broadcast %29 : f32 to vector<2x15x16xf32>
    %83 = arith.addf %82, %81 : vector<2x15x16xf32>
    %84 = vector.broadcast %10 : f32 to vector<2x15x16xf32>
    %85 = arith.mulf %39, %84 : vector<2x15x16xf32>
    %86 = vector.broadcast %11 : f32 to vector<2x15x16xf32>
    %87 = arith.mulf %40, %86 : vector<2x15x16xf32>
    %88 = arith.addf %85, %87 : vector<2x15x16xf32>
    %89 = vector.broadcast %12 : f32 to vector<2x15x16xf32>
    %90 = arith.mulf %41, %89 : vector<2x15x16xf32>
    %91 = arith.addf %88, %90 : vector<2x15x16xf32>
    %92 = arith.addf %83, %91 : vector<2x15x16xf32>
    %93 = vector.broadcast %13 : f32 to vector<2x14x16xf32>
    %94 = arith.mulf %42, %93 : vector<2x14x16xf32>
    %95 = vector.broadcast %14 : f32 to vector<2x14x16xf32>
    %96 = arith.mulf %43, %95 : vector<2x14x16xf32>
    %97 = arith.addf %94, %96 : vector<2x14x16xf32>
    %98 = vector.broadcast %15 : f32 to vector<2x14x16xf32>
    %99 = arith.mulf %44, %98 : vector<2x14x16xf32>
    %100 = arith.addf %97, %99 : vector<2x14x16xf32>
    %101 = vector.broadcast %29 : f32 to vector<2x14x16xf32>
    %102 = arith.addf %101, %100 : vector<2x14x16xf32>
    %cst_6 = arith.constant 5.000000e-01 : f32
    %103 = vector.broadcast %cst_6 : f32 to vector<2x15x16xf32>
    %104 = arith.mulf %103, %63 : vector<2x15x16xf32>
    %cst_7 = arith.constant 0.707106769 : f32
    %105 = vector.broadcast %cst_7 : f32 to vector<2x15x16xf32>
    %106 = arith.mulf %63, %105 : vector<2x15x16xf32>
    %107 = math.erf %106 : vector<2x15x16xf32>
    %cst_8 = arith.constant 1.000000e+00 : f32
    %108 = vector.broadcast %cst_8 : f32 to vector<2x15x16xf32>
    %109 = arith.addf %108, %107 : vector<2x15x16xf32>
    %110 = arith.mulf %104, %109 : vector<2x15x16xf32>
    %cst_9 = arith.constant 5.000000e-01 : f32
    %111 = vector.broadcast %cst_9 : f32 to vector<2x14x16xf32>
    %112 = arith.mulf %111, %73 : vector<2x14x16xf32>
    %cst_10 = arith.constant 0.707106769 : f32
    %113 = vector.broadcast %cst_10 : f32 to vector<2x14x16xf32>
    %114 = arith.mulf %73, %113 : vector<2x14x16xf32>
    %115 = math.erf %114 : vector<2x14x16xf32>
    %cst_11 = arith.constant 1.000000e+00 : f32
    %116 = vector.broadcast %cst_11 : f32 to vector<2x14x16xf32>
    %117 = arith.addf %116, %115 : vector<2x14x16xf32>
    %118 = arith.mulf %112, %117 : vector<2x14x16xf32>
    %cst_12 = arith.constant 0.000000e+00 : f32
    %119 = vector.broadcast %cst_12 : f32 to vector<2x1x16xf32>
    %120 = tpu.concatenate %119, %118, %119 in 1 : vector<2x1x16xf32>, vector<2x14x16xf32>, vector<2x1x16xf32> -> vector<2x16x16xf32>
    %cst_13 = arith.constant 0.000000e+00 : f32
    %121 = vector.broadcast %cst_13 : f32 to vector<2x15x1xf32>
    %122 = vector.extract_strided_slice %110 {offsets = [0, 0, 0], sizes = [2, 15, 15], strides = [1, 1, 1]} : vector<2x15x16xf32> to vector<2x15x15xf32>
    %123 = tpu.concatenate %121, %122 in 2 : vector<2x15x1xf32>, vector<2x15x15xf32> -> vector<2x15x16xf32>
    %124 = vector.extract_strided_slice %110 {offsets = [0, 0, 1], sizes = [2, 15, 15], strides = [1, 1, 1]} : vector<2x15x16xf32> to vector<2x15x15xf32>
    %125 = tpu.concatenate %124, %121 in 2 : vector<2x15x15xf32>, vector<2x15x1xf32> -> vector<2x15x16xf32>
    %cst_14 = arith.constant 0.000000e+00 : f32
    %126 = vector.broadcast %cst_14 : f32 to vector<2x16x1xf32>
    %127 = vector.extract_strided_slice %120 {offsets = [0, 0, 0], sizes = [2, 16, 15], strides = [1, 1, 1]} : vector<2x16x16xf32> to vector<2x16x15xf32>
    %128 = tpu.concatenate %126, %127 in 2 : vector<2x16x1xf32>, vector<2x16x15xf32> -> vector<2x16x16xf32>
    %129 = vector.extract_strided_slice %120 {offsets = [0, 0, 1], sizes = [2, 16, 15], strides = [1, 1, 1]} : vector<2x16x16xf32> to vector<2x16x15xf32>
    %130 = tpu.concatenate %129, %126 in 2 : vector<2x16x15xf32>, vector<2x16x1xf32> -> vector<2x16x16xf32>
    %131 = vector.extract_strided_slice %128 {offsets = [0, 1, 0], sizes = [2, 15, 16], strides = [1, 1, 1]} : vector<2x16x16xf32> to vector<2x15x16xf32>
    %132 = vector.broadcast %19 : f32 to vector<2x15x16xf32>
    %133 = arith.mulf %131, %132 : vector<2x15x16xf32>
    %134 = vector.extract_strided_slice %120 {offsets = [0, 1, 0], sizes = [2, 15, 16], strides = [1, 1, 1]} : vector<2x16x16xf32> to vector<2x15x16xf32>
    %135 = vector.broadcast %20 : f32 to vector<2x15x16xf32>
    %136 = arith.mulf %134, %135 : vector<2x15x16xf32>
    %137 = arith.addf %133, %136 : vector<2x15x16xf32>
    %138 = vector.extract_strided_slice %130 {offsets = [0, 1, 0], sizes = [2, 15, 16], strides = [1, 1, 1]} : vector<2x16x16xf32> to vector<2x15x16xf32>
    %139 = vector.broadcast %21 : f32 to vector<2x15x16xf32>
    %140 = arith.mulf %138, %139 : vector<2x15x16xf32>
    %141 = arith.addf %137, %140 : vector<2x15x16xf32>
    %142 = vector.broadcast %30 : f32 to vector<2x15x16xf32>
    %143 = arith.addf %142, %141 : vector<2x15x16xf32>
    %144 = vector.broadcast %22 : f32 to vector<2x15x16xf32>
    %145 = arith.mulf %123, %144 : vector<2x15x16xf32>
    %146 = vector.broadcast %23 : f32 to vector<2x15x16xf32>
    %147 = arith.mulf %110, %146 : vector<2x15x16xf32>
    %148 = arith.addf %145, %147 : vector<2x15x16xf32>
    %149 = vector.broadcast %24 : f32 to vector<2x15x16xf32>
    %150 = arith.mulf %125, %149 : vector<2x15x16xf32>
    %151 = arith.addf %148, %150 : vector<2x15x16xf32>
    %152 = arith.addf %143, %151 : vector<2x15x16xf32>
    %153 = vector.extract_strided_slice %128 {offsets = [0, 0, 0], sizes = [2, 15, 16], strides = [1, 1, 1]} : vector<2x16x16xf32> to vector<2x15x16xf32>
    %154 = vector.broadcast %25 : f32 to vector<2x15x16xf32>
    %155 = arith.mulf %153, %154 : vector<2x15x16xf32>
    %156 = vector.extract_strided_slice %120 {offsets = [0, 0, 0], sizes = [2, 15, 16], strides = [1, 1, 1]} : vector<2x16x16xf32> to vector<2x15x16xf32>
    %157 = vector.broadcast %26 : f32 to vector<2x15x16xf32>
    %158 = arith.mulf %156, %157 : vector<2x15x16xf32>
    %159 = arith.addf %155, %158 : vector<2x15x16xf32>
    %160 = vector.extract_strided_slice %130 {offsets = [0, 0, 0], sizes = [2, 15, 16], strides = [1, 1, 1]} : vector<2x16x16xf32> to vector<2x15x16xf32>
    %161 = vector.broadcast %27 : f32 to vector<2x15x16xf32>
    %162 = arith.mulf %160, %161 : vector<2x15x16xf32>
    %163 = arith.addf %159, %162 : vector<2x15x16xf32>
    %164 = arith.addf %152, %163 : vector<2x15x16xf32>
    %165 = arith.addf %164, %92 : vector<2x15x16xf32>
    %166 = vector.extract_strided_slice %123 {offsets = [0, 1, 0], sizes = [2, 14, 16], strides = [1, 1, 1]} : vector<2x15x16xf32> to vector<2x14x16xf32>
    %167 = vector.broadcast %19 : f32 to vector<2x14x16xf32>
    %168 = arith.mulf %166, %167 : vector<2x14x16xf32>
    %169 = vector.extract_strided_slice %110 {offsets = [0, 1, 0], sizes = [2, 14, 16], strides = [1, 1, 1]} : vector<2x15x16xf32> to vector<2x14x16xf32>
    %170 = vector.broadcast %20 : f32 to vector<2x14x16xf32>
    %171 = arith.mulf %169, %170 : vector<2x14x16xf32>
    %172 = arith.addf %168, %171 : vector<2x14x16xf32>
    %173 = vector.extract_strided_slice %125 {offsets = [0, 1, 0], sizes = [2, 14, 16], strides = [1, 1, 1]} : vector<2x15x16xf32> to vector<2x14x16xf32>
    %174 = vector.broadcast %21 : f32 to vector<2x14x16xf32>
    %175 = arith.mulf %173, %174 : vector<2x14x16xf32>
    %176 = arith.addf %172, %175 : vector<2x14x16xf32>
    %177 = vector.broadcast %30 : f32 to vector<2x14x16xf32>
    %178 = arith.addf %177, %176 : vector<2x14x16xf32>
    %179 = vector.extract_strided_slice %128 {offsets = [0, 1, 0], sizes = [2, 14, 16], strides = [1, 1, 1]} : vector<2x16x16xf32> to vector<2x14x16xf32>
    %180 = vector.broadcast %22 : f32 to vector<2x14x16xf32>
    %181 = arith.mulf %179, %180 : vector<2x14x16xf32>
    %182 = vector.extract_strided_slice %120 {offsets = [0, 1, 0], sizes = [2, 14, 16], strides = [1, 1, 1]} : vector<2x16x16xf32> to vector<2x14x16xf32>
    %183 = vector.broadcast %23 : f32 to vector<2x14x16xf32>
    %184 = arith.mulf %182, %183 : vector<2x14x16xf32>
    %185 = arith.addf %181, %184 : vector<2x14x16xf32>
    %186 = vector.extract_strided_slice %130 {offsets = [0, 1, 0], sizes = [2, 14, 16], strides = [1, 1, 1]} : vector<2x16x16xf32> to vector<2x14x16xf32>
    %187 = vector.broadcast %24 : f32 to vector<2x14x16xf32>
    %188 = arith.mulf %186, %187 : vector<2x14x16xf32>
    %189 = arith.addf %185, %188 : vector<2x14x16xf32>
    %190 = arith.addf %178, %189 : vector<2x14x16xf32>
    %191 = vector.extract_strided_slice %123 {offsets = [0, 0, 0], sizes = [2, 14, 16], strides = [1, 1, 1]} : vector<2x15x16xf32> to vector<2x14x16xf32>
    %192 = vector.broadcast %25 : f32 to vector<2x14x16xf32>
    %193 = arith.mulf %191, %192 : vector<2x14x16xf32>
    %194 = vector.extract_strided_slice %110 {offsets = [0, 0, 0], sizes = [2, 14, 16], strides = [1, 1, 1]} : vector<2x15x16xf32> to vector<2x14x16xf32>
    %195 = vector.broadcast %26 : f32 to vector<2x14x16xf32>
    %196 = arith.mulf %194, %195 : vector<2x14x16xf32>
    %197 = arith.addf %193, %196 : vector<2x14x16xf32>
    %198 = vector.extract_strided_slice %125 {offsets = [0, 0, 0], sizes = [2, 14, 16], strides = [1, 1, 1]} : vector<2x15x16xf32> to vector<2x14x16xf32>
    %199 = vector.broadcast %27 : f32 to vector<2x14x16xf32>
    %200 = arith.mulf %198, %199 : vector<2x14x16xf32>
    %201 = arith.addf %197, %200 : vector<2x14x16xf32>
    %202 = arith.addf %190, %201 : vector<2x14x16xf32>
    %203 = arith.addf %202, %102 : vector<2x14x16xf32>
    %204 = tpu.concatenate %203, %119 in 1 : vector<2x14x16xf32>, vector<2x1x16xf32> -> vector<2x15x16xf32>
    %205 = tpu.concatenate %165, %204 in 2 : vector<2x15x16xf32>, vector<2x15x16xf32> -> vector<2x15x32xf32>
    %c0_15 = arith.constant 0 : index
    %c0_16 = arith.constant 0 : index
    %c0_17 = arith.constant 0 : index
    %206 = vector.load %arg4[%c0_15, %c0_16, %c0_17] : memref<2x15x32xf32, #tpu.memory_space<vmem>>, vector<2x15x32xf32>
    tpu.vector_store %arg4[%c0_15, %c0_16, %c0_17], %205 {strides = array<i32>} : memref<2x15x32xf32, #tpu.memory_space<vmem>>, vector<2x15x32xf32>,
    return
  }
  func.func @transform_0(%arg0: i32) -> (i32, i32, i32) {
    %c0_i32 = arith.constant 0 : i32
    %c0_i32_0 = arith.constant 0 : i32
    %c0_i32_1 = arith.constant 0 : i32
    return %arg0, %c0_i32, %c0_i32_0 : i32, i32, i32
  }
  func.func @transform_1(%arg0: i32) -> i32 {
    %c0_i32 = arith.constant 0 : i32
    %c0_i32_0 = arith.constant 0 : i32
    return %c0_i32 : i32
  }
  func.func @transform_2(%arg0: i32) -> i32 {
    %c0_i32 = arith.constant 0 : i32
    %c0_i32_0 = arith.constant 0 : i32
    return %c0_i32 : i32
  }
  func.func @transform_3(%arg0: i32) -> (i32, i32, i32) {
    %c0_i32 = arith.constant 0 : i32
    %c0_i32_0 = arith.constant 0 : i32
    %c0_i32_1 = arith.constant 0 : i32
    return %arg0, %c0_i32, %c0_i32_0 : i32, i32, i32
  }
}

</mosaic_0001>

<bundles_post_ra>
// kernel: squeeze.3
= control target key start
LH: loop header
LB: loop body
LE: loop exit
PB: predicated region body
PF: predicated region fallthrough
CT: control target
= control target key end

     0   :  { %vm7_vm0 = vcmask 23552   ;;  %s30_s8 = smov 3   ;;  %vm13_vm1 = vcmask 72752   ;;  %vm19_vm2 = vcmask 48152   ;;  %s47_s0 = inlined_call_operand.vmem [shape: f32[3,3], index: 0, kind: input, shape index: {}]   ;;  %s48_s1 = inlined_call_operand.vmem [shape: f32[9], index: 1, kind: output, shape index: {}]  }
   0x1   :  { %v4_v0 = vld [vmem:[%s47_s0] sm:$0xf]  ;;  %s29_s0 = smov 6  }
   0x2   :  { %5 = vst [vmem:[#allocation1] sm:$0xf] %v4_v0 }
   0x9   :  { %v10_v1 = vld [vmem:[#allocation1 + $0x2] sm:$0x1]   ;;  %v6_v2 = vld [vmem:[#allocation1] sm:$0x1]   ;;  %v16_v3 = vld [vmem:[#allocation1 + $0x1] sm:$0x1]  }
   0xa   :  { %11 = vrot.lane.b32.xlu0 %v10_v1, %s29_s0  ;;  %8 = vst.msk [vmem:[#allocation0] sm:$0x1] %vm7_vm0, %v6_v2  }
   0xe   :  { %17 = vrot.lane.b32.xlu0 %v16_v3, %s30_s8 }
  0x7c   :  { %v12_v4 = vpop.permute.xlu0 %11  }
  0x7d   :  { %14 = vst.msk [vmem:[#allocation0] sm:$0x1] %vm13_vm1, %v12_v4  }
  0x80   :  { %v18_v5 = vpop.permute.xlu0 %17  }
  0x81   :  { %20 = vst.msk [vmem:[#allocation0] sm:$0x1] %vm19_vm2, %v18_v5  }
  0x88   :  { %v24_v6 = vld [vmem:[#allocation0] sm:$0x1] }
  0x89   :  { %26 = vst [vmem:[%s48_s1] sm:$0x1] %v24_v6 }

// kernel: residual_block.1
= control target key start
LH: loop header
LB: loop body
LE: loop exit
PB: predicated region body
PF: predicated region fallthrough
CT: control target
= control target key end

     0   :  { %8 = vsyncpa [#allocation3], 0  ;;  %s1366_s0 = inlined_call_operand.vmem [shape: f32[2,16,16], index: 0, kind: input, shape index: {}]   ;;  %s1367_s1 = inlined_call_operand.vmem [shape: f32[27], index: 1, kind: input, shape index: {}]   ;;  %s1368_s2 = inlined_call_operand.vmem [shape: f32[3], index: 2, kind: input, shape index: {}]   ;;  %s1369_s3 = inlined_call_operand.vmem [shape: f32[2,15,32], index: 3, kind: output, shape index: {}]  }
   0x1   :  { %s18_s14 = sshll.u32 %s1367_s1, 4  ;;  %s19_s14 = int_to_ptr.vmem [resolvable:$true] %s18_s14 }
   0x2   :  { %9 = vsyncpa [#allocation5], 0  ;;  %s28_s17 = sshll.u32 %s1368_s2, 4  ;;  %s740_s18 = scalar_lea.vmem %s19_s14, 16  ;;  %s29_s17 = int_to_ptr.vmem [resolvable:$true] %s28_s17 }
   0x3   :  { %p741_p0 = scmp.ne.s32.totalorder %s19_s14, %s740_s18  ;;  %p745_p1 = scmp.lt.s32.totalorder %s19_s14, %s19_s14 }
   0x4   :  { %p746_p2 = scmp.lt.s32.totalorder %s740_s18, %s740_s18 }
   0x6   :  { %p747_p3 = por %p746_p2, %p745_p1 }
   0x8   :  { %p748_p4 = pnand %p747_p3, %p741_p0 }
   0xa   :  { %751 = shalt.err (!%p748_p4)
}
   0xb   :  { %s768_s19 = smov [#allocation2]   ;;  %s752_s20 = scalar_lea.vmem %s29_s17, 16 }
   0xc   :  { %21 = dma.vmem_to_smem %s19_s14, 16, %s768_s19, [#allocation3]  }
   0xd   :  { %p753_p5 = scmp.ne.s32.totalorder %s29_s17, %s752_s20  ;;  %p757_p6 = scmp.lt.s32.totalorder %s29_s17, %s29_s17 }
   0xe   :  { %p758_p7 = scmp.lt.s32.totalorder %s752_s20, %s752_s20 }
  0x10   :  { %p759_p8 = por %p758_p7, %p757_p6 }
  0x12   :  { %p760_p9 = pnand %p759_p8, %p753_p5 }
  0x14   :  { %763 = shalt.err (!%p760_p9)
}
  0x15   :  { %s769_s1 = smov [#allocation4]  }
  0x16   :  { %31 = dma.vmem_to_smem %s29_s17, 16, %s769_s1, [#allocation5]  }
  0x17   :  { %764 = dma.done.wait [#allocation3], 16  }
  0x18   :  { %765 = vsyncadd [#allocation3], 4294967280 }
  0x19   :  { %766 = dma.done.wait [#allocation5], 16  }
  0x1a   :  { %767 = vsyncadd [#allocation5], 4294967280 }
  0x1b   :  { %38 = sfence }
  0x1c   :  { %v41_v0 = vld [vmem:[%s1366_s0 + $0x10] sm:$0xff]  ;;  %v39_v1 = vld [vmem:[%s1366_s0] sm:$0xff]  ;;  %s770_s24 = smov 1   ;;  %v42_v2 = vld [vmem:[%s1366_s0 + $0x18] sm:$0xff]  ;;  %s771_s29 = smov 127   ;;  %vm89_vm0 = vcmask 7168  }
  0x1d   :  { %81 = vrot.lane.b32.xlu1 %v41_v0, %s770_s24  ;;  %77 = vrot.lane.b32.xlu0 %v39_v1, %s770_s24  ;;  %v813_v3 = vld [vmem:[%s1366_s0 + $0x8] sm:$0xff]  ;;  %s43_s30 = sld [smem:[#allocation2]]  ;;  %s691_s4 = sld [smem:[#allocation2 + $0x1]]  ;;  %vm106_vm1 = vcmask 121856   ;;  %vm166_vm2 = vcmask 1046528   ;;  %vm344_vm3 = vcmask 1040384  }
  0x1e   :  { %s693_s5 = sld [smem:[#allocation2 + $0x3]]  ;;  %s694_s0 = sld [smem:[#allocation2 + $0x4]]  ;;  %vm651_vm4 = vcmask 1045504   ;;  %vm674_vm5 = vcmask 130048   ;;  %vm679_vm6 = vcmask 261121   ;;  %vm681_vm7 = vcmask 261120  }
  0x1f   :  { %s697_s6 = sld [smem:[#allocation2 + $0x7]]  ;;  %s700_s7 = sld [smem:[#allocation2 + $0xa]] }
  0x20   :  { %s696_s8 = sld [smem:[#allocation2 + $0x6]]  ;;  %s703_s9 = sld [smem:[#allocation2 + $0xd]] }
  0x21   :  { %83 = vrot.lane.b32.xlu1 %v42_v2, %s770_s24  ;;  %79 = vrot.lane.b32.xlu0 %v813_v3, %s770_s24  ;;  %s699_s10 = sld [smem:[#allocation2 + $0x9]]  ;;  %s706_s11 = sld [smem:[#allocation2 + $0x10]] }
  0x22   :  { %s702_s12 = sld [smem:[#allocation2 + $0xc]]  ;;  %s705_s13 = sld [smem:[#allocation2 + $0xf]] }
  0x23   :  { %s823_s14 = sld [smem:[#allocation2 + $0x2]]  ;;  %v144_v4 = vstv %s691_s4  ;;  %v825_v7 = vstv %s43_s30  ;;  %s829_s15 = sld [smem:[#allocation2 + $0x8]] }
  0x24   :  { %v186_v5 = vstv %s694_s0  ;;  %v827_v8 = vstv %s693_s5  ;;  %v147_v12 = vmul.f32 %v144_v4, %v41_v0  ;;  %v833_v13 = vmul.f32 %v144_v4, %v39_v1  ;;  %s835_s16 = sld [smem:[#allocation2 + $0x5]]  ;;  %s837_s17 = sld [smem:[#allocation4]] }
  0x25   :  { %96 = vrot.lane.b32.xlu1 %v813_v3, %s771_s29  ;;  %94 = vrot.lane.b32.xlu0 %v39_v1, %s771_s29  ;;  %v116_v6 = vstv %s697_s6  ;;  %v241_v9 = vstv %s700_s7  ;;  %v189_v16 = vmul.f32 %v186_v5, %v41_v0  ;;  %v841_v17 = vmul.f32 %v186_v5, %v39_v1  ;;  %s843_s18 = sld [smem:[#allocation2 + $0x11]]  ;;  %s851_s20 = sld [smem:[#allocation2 + $0xb]] }
  0x26   :  { %v831_v10 = vstv %s696_s8  ;;  %v282_v11 = vstv %s703_s9  ;;  %v119_v19 = vmul.f32 %v116_v6, %v41_v0  ;;  %v244_v20 = vmul.f32 %v241_v9, %v41_v0  ;;  %s847_s19 = sld [smem:[#allocation4 + $0x1]]  ;;  %s853_s1 = sld [smem:[#allocation2 + $0xe]] }
  0x27   :  { %v213_v14 = vstv %s706_s11  ;;  %v839_v15 = vstv %s699_s10  ;;  %v117_v21 = vmul.f32 %v116_v6, %v39_v1  ;;  %v285_v23 = vmul.f32 %v282_v11, %v41_v0  ;;  %s712_s2 = sld [smem:[#allocation2 + $0x16]]  ;;  %s709_s21 = sld [smem:[#allocation2 + $0x13]] }
  0x28   :  { %v845_v18 = vstv %s702_s12  ;;  %v849_v22 = vstv %s705_s13  ;;  %v242_v24 = vmul.f32 %v241_v9, %v39_v1  ;;  %v283_v25 = vmul.f32 %v282_v11, %v39_v1  ;;  %s715_s22 = sld [smem:[#allocation2 + $0x19]]  ;;  %s708_s23 = sld [smem:[#allocation2 + $0x12]] }
  0x29   :  { %100 = vrot.lane.b32.xlu1 %v42_v2, %s771_s29  ;;  %98 = vrot.lane.b32.xlu0 %v41_v0, %s771_s29  ;;  %v216_v26 = vmul.f32 %v213_v14, %v41_v0  ;;  %v214_v27 = vmul.f32 %v213_v14, %v39_v1  ;;  %v120_v28 = vmul.f32 %v116_v6, %v42_v2  ;;  %v856_v29 = vstv %s823_s14  ;;  %s711_s25 = sld [smem:[#allocation2 + $0x15]]  ;;  %s714_s26 = sld [smem:[#allocation2 + $0x18]] }
  0x2a   :  { %v858_v30 = vmul.f32 %v144_v4, %v42_v2  ;;  %v860_v31 = vmul.f32 %v186_v5, %v42_v2  ;;  %v217_v32 = vmul.f32 %v213_v14, %v42_v2  ;;  %v245_v33 = vmul.f32 %v241_v9, %v42_v2  ;;  %s713_s27 = sld [smem:[#allocation2 + $0x17]]  ;;  %s716_s28 = sld [smem:[#allocation2 + $0x1a]] }
  0x2b   :  { %v286_v34 = vmul.f32 %v282_v11, %v42_v2  ;;  %v863_v35 = vmul.f32 %v116_v6, %v813_v3  ;;  %v866_v36 = vmul.f32 %v144_v4, %v813_v3  ;;  %v869_v37 = vmul.f32 %v186_v5, %v813_v3  ;;  %s1149_s30 = sld [smem:[#allocation4 + $0x2]] }
  0x2c   :  { %v872_v40 = vmul.f32 %v213_v14, %v813_v3  ;;  %v875_v41 = vmul.f32 %v241_v9, %v813_v3  ;;  %v878_v42 = vmul.f32 %v282_v11, %v813_v3  ;;  %v881_v43 = vstv %s829_s15 }
  0x2d   :  { %v886_v46 = vstv %s837_s17  ;;  %v889_v47 = vstv %s835_s16  ;;  %v895_v51 = vstv %s843_s18  ;;  %v901_v55 = vstv %s847_s19 }
  0x2e   :  { %v907_v60 = vstv %s851_s20  ;;  %v910_v61 = vstv %s853_s1 }
  0x8f   :  { %v82_v38 = vpop.permute.xlu1 %81  ;;  %v78_v39 = vpop.permute.xlu0 %77 }
  0x90   :  { %v92_v44 = vsel %vm89_vm0, 0.0, %v82_v38  ;;  %v90_v45 = vsel %vm89_vm0, 0.0, %v78_v39 }
  0x91   :  { %v114_v48 = vmul.f32 %v831_v10, %v92_v44  ;;  %v142_v49 = vmul.f32 %v825_v7, %v92_v44  ;;  %v211_v50 = vmul.f32 %v849_v22, %v92_v44  ;;  %v184_v52 = vmul.f32 %v827_v8, %v92_v44 }
  0x92   :  { %v239_v53 = vmul.f32 %v839_v15, %v92_v44  ;;  %v280_v54 = vmul.f32 %v845_v18, %v92_v44  ;;  %v112_v57 = vmul.f32 %v831_v10, %v90_v45  ;;  %v140_v1 = vmul.f32 %v825_v7, %v90_v45 }
  0x93   :  { %v903_v56 = vadd.f32 %v216_v26, %v211_v50  ;;  %v84_v58 = vpop.permute.xlu1 %83  ;;  %v80_v59 = vpop.permute.xlu0 %79  ;;  %v912_v62 = vadd.f32 %v119_v19, %v114_v48  ;;  %v919_v2 = vadd.f32 %v147_v12, %v142_v49  ;;  %v209_v3 = vmul.f32 %v849_v22, %v90_v45 }
  0x94   :  { %v914_v63 = vadd.f32 %v244_v20, %v239_v53  ;;  %v916_v0 = vadd.f32 %v285_v23, %v280_v54  ;;  %v237_v4 = vmul.f32 %v839_v15, %v90_v45  ;;  %v278_v5 = vmul.f32 %v845_v18, %v90_v45 }
  0x95   :  { %v924_v6 = vadd.f32 %v189_v16, %v184_v52  ;;  %v182_v9 = vmul.f32 %v827_v8, %v90_v45  ;;  %v93_v11 = vsel %vm89_vm0, 0.0, %v84_v58  ;;  %v91_v14 = vsel %vm89_vm0, 0.0, %v80_v59 }
  0x96   :  { %v121_v19 = vadd.f32 %v117_v21, %v112_v57  ;;  %v929_v20 = vadd.f32 %v214_v27, %v209_v3  ;;  %v931_v23 = vadd.f32 %v242_v24, %v237_v4  ;;  %v933_v12 = vadd.f32 %v283_v25, %v278_v5 }
  0x97   :  { %v97_v26 = vpop.permute.xlu1 %96  ;;  %v115_v38 = vmul.f32 %v831_v10, %v93_v11  ;;  %v143_v39 = vmul.f32 %v825_v7, %v93_v11  ;;  %v185_v16 = vmul.f32 %v827_v8, %v93_v11  ;;  %v212_v44 = vmul.f32 %v849_v22, %v93_v11  ;;  %v95_v52 = vpop.permute.xlu0 %94 }
  0x98   :  { %v240_v45 = vmul.f32 %v839_v15, %v93_v11  ;;  %v281_v48 = vmul.f32 %v845_v18, %v93_v11  ;;  %v113_v21 = vmul.f32 %v831_v10, %v91_v14  ;;  %v141_v24 = vmul.f32 %v825_v7, %v91_v14 }
  0x99   :  { %v149_v25 = vadd.f32 %v833_v13, %v140_v1  ;;  %v945_v27 = vadd.f32 %v841_v17, %v182_v9  ;;  %v124_v49 = vadd.f32 %v120_v28, %v115_v38  ;;  %v947_v50 = vadd.f32 %v217_v32, %v212_v44 }
  0x9a   :  { %v152_v53 = vadd.f32 %v858_v30, %v143_v39  ;;  %v951_v54 = vadd.f32 %v860_v31, %v185_v16  ;;  %v953_v57 = vadd.f32 %v245_v33, %v240_v45  ;;  %v955_v58 = vadd.f32 %v286_v34, %v281_v48 }
  0x9b   :  { %v101_v7 = vpop.permute.xlu1 %100  ;;  %v122_v10 = vadd.f32 %v863_v35, %v113_v21  ;;  %v210_v13 = vmul.f32 %v849_v22, %v91_v14  ;;  %v238_v17 = vmul.f32 %v839_v15, %v91_v14  ;;  %v279_v28 = vmul.f32 %v845_v18, %v91_v14  ;;  %v99_v4 = vpop.permute.xlu0 %98 }
  0x9c   :  { %v150_v32 = vadd.f32 %v866_v36, %v141_v24  ;;  %v183_v30 = vmul.f32 %v827_v8, %v91_v14  ;;  %v108_v31 = vsel %vm106_vm1, %v97_v26, 0.0  ;;  %v107_v33 = vsel %vm106_vm1, %v95_v52, 0.0 }
  0x9d   :  { %v219_v34 = vadd.f32 %v872_v40, %v210_v13  ;;  %v247_v59 = vadd.f32 %v875_v41, %v238_v17  ;;  %v288_v35 = vadd.f32 %v878_v42, %v279_v28  ;;  %v110_v22 = vsel %vm106_vm1, %v101_v7, 0.0 }
  0x9e   :  { %v127_v15 = vmul.f32 %v881_v43, %v108_v31  ;;  %v155_v18 = vmul.f32 %v856_v29, %v108_v31  ;;  %v197_v36 = vmul.f32 %v889_v47, %v108_v31  ;;  %v224_v8 = vmul.f32 %v895_v51, %v108_v31 }
  0x9f   :  { %v252_v1 = vmul.f32 %v907_v60, %v108_v31  ;;  %v293_v3 = vmul.f32 %v910_v61, %v108_v31  ;;  %v126_v40 = vmul.f32 %v881_v43, %v107_v33  ;;  %v154_v41 = vmul.f32 %v856_v29, %v107_v33 }
  0xa0   :  { %v192_v42 = vadd.f32 %v869_v37, %v183_v30  ;;  %v131_v5 = vadd.f32 %v127_v15, %v122_v10  ;;  %v159_v9 = vadd.f32 %v155_v18, %v150_v32  ;;  %v228_v11 = vadd.f32 %v224_v8, %v219_v34 }
  0xa1   :  { %v978_v14 = vadd.f32 %v252_v1, %v247_v59  ;;  %v980_v26 = vadd.f32 %v293_v3, %v288_v35  ;;  %v130_v38 = vadd.f32 %v126_v40, %v121_v19  ;;  %v158_v39 = vadd.f32 %v154_v41, %v149_v25 }
  0xa2   :  { %v136_v16 = vadd.f32 %v886_v46, %v131_v5  ;;  %v168_v44 = vrot.slane %v159_v9, 1  ;;  %v984_v45 = vadd.f32 %v901_v55, %v228_v11  ;;  %v109_v48 = vsel %vm106_vm1, %v99_v4, 0.0 }
  0xa3   :  { %v201_v21 = vadd.f32 %v197_v36, %v192_v42  ;;  %v135_v37 = vadd.f32 %v886_v46, %v130_v38  ;;  %v167_v24 = vrot.slane %v158_v39, 1  ;;  %v223_v52 = vmul.f32 %v895_v51, %v107_v33 }
  0xa4   :  { %v178_v7 = vadd.f32 %v168_v44, %v136_v16  ;;  %v196_v10 = vmul.f32 %v889_v47, %v107_v33  ;;  %v251_v19 = vmul.f32 %v907_v60, %v107_v33  ;;  %v292_v25 = vmul.f32 %v910_v61, %v107_v33 }
  0xa5   :  { %v169_v13 = vsel %vm166_vm2, %v167_v24, %v168_v44  ;;  %v994_v17 = vadd.f32 %v223_v52, %v929_v20  ;;  %v129_v28 = vmul.f32 %v881_v43, %v110_v22  ;;  %v157_v32 = vmul.f32 %v856_v29, %v110_v22 }
  0xa6   :  { %v309_v30 = vmul.f32 0.70710677, %v178_v7  ;;  %v998_v31 = vadd.f32 %v169_v13, %v135_v37  ;;  %v1001_v34 = vadd.f32 %v251_v19, %v931_v23  ;;  %v1004_v59 = vadd.f32 %v292_v25, %v933_v12 }
  0xa7   :  { %v133_v35 = vadd.f32 %v129_v28, %v124_v49  ;;  %v161_v33 = vadd.f32 %v157_v32, %v152_v53  ;;  %v199_v15 = vmul.f32 %v889_v47, %v110_v22  ;;  %v226_v20 = vmul.f32 %v895_v51, %v110_v22 }
  0xa8   :  { %724 = verf.f32 %v309_v30  ;;  %v200_v18 = vadd.f32 %v196_v10, %v945_v27  ;;  %v254_v36 = vmul.f32 %v907_v60, %v110_v22  ;;  %v295_v8 = vmul.f32 %v910_v61, %v110_v22 }
  0xa9   :  { %v138_v1 = vadd.f32 %v886_v46, %v133_v35  ;;  %v171_v23 = vrot.slane %v161_v33, 1  ;;  %v203_v3 = vadd.f32 %v199_v15, %v951_v54  ;;  %v230_v12 = vadd.f32 %v226_v20, %v947_v50 }
  0xaa   :  { %v258_v49 = vadd.f32 %v254_v36, %v953_v57  ;;  %v1016_v53 = vadd.f32 %v295_v8, %v955_v58  ;;  %v128_v40 = vmul.f32 %v881_v43, %v109_v48  ;;  %v156_v27 = vmul.f32 %v856_v29, %v109_v48 }
  0xab   :  { %v180_v41 = vadd.f32 %v171_v23, %v138_v1  ;;  %v235_v22 = vadd.f32 %v901_v55, %v230_v12  ;;  %v198_v4 = vmul.f32 %v889_v47, %v109_v48  ;;  %v225_v42 = vmul.f32 %v895_v51, %v109_v48 }
  0xac   :  { %v132_v54 = vadd.f32 %v128_v40, %v912_v62  ;;  %v160_v50 = vadd.f32 %v156_v27, %v919_v2  ;;  %v253_v57 = vmul.f32 %v907_v60, %v109_v48  ;;  %v294_v29 = vmul.f32 %v910_v61, %v109_v48 }
  0xad   :  { %v311_v5 = vmul.f32 0.70710677, %v180_v41  ;;  %v202_v58 = vadd.f32 %v198_v4, %v924_v6  ;;  %v229_v43 = vadd.f32 %v225_v42, %v903_v56  ;;  %v205_v51 = vadd.f32 %v201_v21, %v886_v46 }
  0xae   :  { %v137_v9 = vadd.f32 %v886_v46, %v132_v54  ;;  %v170_v11 = vrot.slane %v160_v50, 1  ;;  %v257_v47 = vadd.f32 %v253_v57, %v914_v63  ;;  %v1033_v62 = vadd.f32 %v294_v29, %v916_v0 }
  0xaf   :  { %726 = verf.f32 %v311_v5  ;;  %v204_v60 = vadd.f32 %v200_v18, %v886_v46  ;;  %v207_v2 = vadd.f32 %v203_v3, %v886_v46  ;;  %v329_v56 = vmul.f32 0.70710677, %v205_v51 }
  0xb0   :  { %v172_v6 = vsel %vm166_vm2, %v170_v11, %v171_v23  ;;  %v1040_v39 = vstv %s712_s2  ;;  %v264_v63 = vrot.slane %v978_v14, 1  ;;  %v206_v0 = vadd.f32 %v202_v58, %v886_v46 }
  0xb1   :  { %v1038_v38 = vadd.f32 %v172_v6, %v137_v9  ;;  %v328_v61 = vmul.f32 0.70710677, %v204_v60  ;;  %728 = verf.f32 %v329_v56  ;;  %v331_v44 = vmul.f32 0.70710677, %v207_v2 }
  0xb2   :  { %v725_v16 = vpop.eup %724  ;;  %v305_v48 = vmul.f32 0.5, %v178_v7  ;;  %v308_v37 = vmul.f32 0.70710677, %v998_v31  ;;  %v263_v24 = vrot.slane %v1001_v34, 1  ;;  %v267_v52 = vrot.slane %v258_v49, 1 }
  0xb3   :  { %730 = verf.f32 %v328_v61  ;;  %v317_v21 = vadd.f32 1.0, %v725_v16  ;;  %v330_v10 = vmul.f32 0.70710677, %v206_v0  ;;  %v266_v19 = vrot.slane %v257_v47, 1 }
  0xb4   :  { %732 = verf.f32 %v331_v44  ;;  %v310_v14 = vmul.f32 0.70710677, %v1038_v38  ;;  %v232_v7 = vadd.f32 %v901_v55, %v994_v17  ;;  %v265_v13 = vsel %vm166_vm2, %v263_v24, %v264_v63 }
  0xb5   :  { %v1046_v25 = vmul.f32 %v317_v21, %v305_v48  ;;  %734 = verf.f32 %v308_v37  ;;  %v274_v28 = vadd.f32 %v264_v63, %v984_v45  ;;  %v234_v30 = vadd.f32 %v901_v55, %v229_v43 }
  0xb6   :  { %736 = verf.f32 %v330_v10  ;;  %v268_v34 = vsel %vm166_vm2, %v266_v19, %v267_v52  ;;  %v276_v35 = vadd.f32 %v267_v52, %v235_v22  ;;  %v307_v33 = vmul.f32 0.5, %v180_v41 }
  0xb7   :  { %738 = verf.f32 %v310_v14  ;;  %v1051_v46 = vmul.f32 %v1040_v39, %v1046_v25  ;;  %v1059_v20 = vadd.f32 %v265_v13, %v232_v7  ;;  %v1061_v18 = vadd.f32 %v268_v34, %v234_v30 }
  0xb8   :  { %v1065_v17 = vstv %s709_s21  ;;  %v536_v1 = vrot.slane %v274_v28, 7  ;;  %v325_v3 = vmul.f32 0.5, %v205_v51  ;;  %v539_v40 = vrot.slane %v276_v35, 7 }
  0xb9   :  { %v727_v32 = vpop.eup %726  ;;  %v535_v45 = vrot.slane %v1059_v20, 7  ;;  %v538_v49 = vrot.slane %v1061_v18, 7  ;;  %v324_v41 = vmul.f32 0.5, %v204_v60  ;;  %v1069_v4 = vstv %s715_s22 }
  0xba   :  { %v319_v15 = vadd.f32 1.0, %v727_v32  ;;  %v327_v57 = vmul.f32 0.5, %v207_v2  ;;  %v304_v58 = vmul.f32 0.5, %v998_v31  ;;  %v326_v9 = vmul.f32 0.5, %v206_v0 }
  0xbb   :  { %v729_v36 = vpop.eup %728  ;;  %v1079_v47 = vsel %vm344_vm3, %v535_v45, %v536_v1  ;;  %v1087_v2 = vsel %vm344_vm3, %v538_v49, %v539_v40  ;;  %v306_v61 = vmul.f32 0.5, %v1038_v38  ;;  %v1151_v32 = vstv %s708_s23 }
  0xbc   :  { %v1063_v8 = vmul.f32 %v319_v15, %v307_v33  ;;  %v337_v12 = vadd.f32 1.0, %v729_v36  ;;  %v1153_v30 = vstv %s711_s25  ;;  %v1155_v34 = vstv %s714_s26 }
  0xbd   :  { %v731_v23 = vpop.eup %730  ;;  %v1159_v35 = vadd.f32 %v1004_v59, %v901_v55  ;;  %v1163_v33 = vadd.f32 %v980_v26, %v901_v55  ;;  %v1167_v36 = vmul.f32 %v1065_v17, %v1046_v25  ;;  %v1171_v1 = vmul.f32 %v1069_v4, %v1046_v25 }
  0xbe   :  { %v733_v27 = vpop.eup %732  ;;  %v336_v22 = vadd.f32 1.0, %v731_v23  ;;  %v1073_v42 = vmul.f32 %v1040_v39, %v1063_v8  ;;  %v341_v50 = vmul.f32 %v337_v12, %v325_v3  ;;  %v1175_v23 = vmul.f32 %v1065_v17, %v1063_v8 }
  0xbf   :  { %v735_v54 = vpop.eup %734  ;;  %v339_v5 = vadd.f32 1.0, %v733_v27  ;;  %v1179_v59 = vadd.f32 %v1016_v53, %v901_v55  ;;  %v1184_v40 = vstv %s713_s27  ;;  %v1188_v27 = vmul.f32 %v1069_v4, %v1063_v8 }
  0xc0   :  { %v737_v43 = vpop.eup %736  ;;  %v340_v29 = vmul.f32 %v336_v22, %v324_v41  ;;  %v316_v11 = vadd.f32 1.0, %v735_v54  ;;  %v1082_v60 = vsel %vm166_vm2, %v341_v50, 0.0  ;;  %v1193_v53 = vstv %s716_s28 }
  0xc1   :  { %v739_v51 = vpop.eup %738  ;;  %v343_v6 = vmul.f32 %v339_v5, %v327_v57  ;;  %v338_v56 = vadd.f32 1.0, %v737_v43  ;;  %391 = vrot.lane.b32.xlu1 %v1082_v60, %s770_s24  ;;  %v428_v63 = vmul.f32 %v1065_v17, %v1082_v60  ;;  %v497_v21 = vmul.f32 %v1069_v4, %v1082_v60 }
  0xc2   :  { %v345_v31 = vsel %vm344_vm3, 0.0, %v340_v29  ;;  %v318_v16 = vadd.f32 1.0, %v739_v51  ;;  %v1097_v48 = vmul.f32 %v316_v11, %v304_v58  ;;  %v578_v54 = vmul.f32 %v1040_v39, %v1082_v60 }
  0xc3   :  { %389 = vrot.lane.b32.xlu0 %v345_v31, %s770_s24  ;;  %v348_v44 = vsel %vm166_vm2, %v343_v6, 0.0  ;;  %v342_v0 = vmul.f32 %v338_v56, %v326_v9  ;;  %v427_v24 = vmul.f32 %v1065_v17, %v345_v31  ;;  %v496_v38 = vmul.f32 %v1069_v4, %v345_v31 }
  0xc4   :  { %v1101_v37 = vmul.f32 %v318_v16, %v306_v61  ;;  %v1107_v10 = vmul.f32 %v1065_v17, %v348_v44  ;;  %v1110_v19 = vmul.f32 %v1069_v4, %v348_v44  ;;  %v1122_v13 = vmul.f32 %v1040_v39, %v1097_v48 }
  0xc5   :  { %v346_v52 = vsel %vm344_vm3, 0.0, %v342_v0  ;;  %395 = vrot.lane.b32.xlu1 %v348_v44, %s770_s24  ;;  %v577_v5 = vmul.f32 %v1040_v39, %v345_v31  ;;  %v580_v43 = vmul.f32 %v1040_v39, %v348_v44  ;;  %v1204_v61 = vstv %s1149_s30 }
  0xc6   :  { %v1114_v14 = vmul.f32 %v1065_v17, %v346_v52  ;;  %v1117_v7 = vmul.f32 %v1069_v4, %v346_v52  ;;  %v1126_v28 = vmul.f32 %v1040_v39, %v1101_v37  ;;  %v579_v9 = vmul.f32 %v1040_v39, %v346_v52 }
  0xc7   :  { %393 = vrot.lane.b32.xlu0 %v346_v52, %s770_s24 }
  0xc9   :  { %407 = vrot.lane.b32.xlu1 %v1082_v60, %s771_s29 }
  0xcb   :  { %405 = vrot.lane.b32.xlu0 %v345_v31, %s771_s29 }
  0xcd   :  { %355 = vrot.lane.b32.xlu1 %v1046_v25, %s770_s24 }
  0xcf   :  { %353 = vrot.lane.b32.xlu0 %v1097_v48, %s770_s24 }
  0xd1   :  { %359 = vrot.lane.b32.xlu1 %v1063_v8, %s770_s24 }
  0xd3   :  { %357 = vrot.lane.b32.xlu0 %v1101_v37, %s770_s24  ;;  %s710_s24 = sld [smem:[#allocation2 + $0x14]] }
  0xd5   :  { %371 = vrot.lane.b32.xlu1 %v1046_v25, %s771_s29 }
  0xd7   :  { %369 = vrot.lane.b32.xlu0 %v1097_v48, %s771_s29 }
  0xd9   :  { %375 = vrot.lane.b32.xlu1 %v1063_v8, %s771_s29  ;;  %v1182_v12 = vstv %s710_s24 }
  0xdb   :  { %373 = vrot.lane.b32.xlu0 %v1101_v37, %s771_s29 }
  0xdd   :  { %411 = vrot.lane.b32.xlu1 %v348_v44, %s771_s29 }
  0xdf   :  { %409 = vrot.lane.b32.xlu0 %v346_v52, %s771_s29  ;;  %s772_s29 = smov 16  }
 0x133   :  { %v392_v15 = vpop.permute.xlu1 %391 }
 0x134   :  { %v402_v26 = vsel %vm89_vm0, 0.0, %v392_v15 }
 0x135   :  { %v390_v3 = vpop.permute.xlu0 %389  ;;  %v423_v25 = vmul.f32 %v1151_v32, %v402_v26  ;;  %v492_v41 = vmul.f32 %v1155_v34, %v402_v26  ;;  %v574_v44 = vmul.f32 %v1153_v30, %v402_v26 }
 0x136   :  { %v401_v22 = vsel %vm89_vm0, 0.0, %v390_v3  ;;  %v601_v3 = vmul.f32 %v1069_v4, %v1097_v48 }
 0x137   :  { %v422_v50 = vmul.f32 %v1151_v32, %v401_v22  ;;  %v491_v57 = vmul.f32 %v1155_v34, %v401_v22  ;;  %v432_v8 = vadd.f32 %v428_v63, %v423_v25  ;;  %v501_v58 = vadd.f32 %v497_v21, %v492_v41  ;;  %v396_v29 = vpop.permute.xlu1 %395 }
 0x138   :  { %v404_v6 = vsel %vm89_vm0, 0.0, %v396_v29  ;;  %v1211_v63 = vmul.f32 %v1065_v17, %v1097_v48  ;;  %v573_v39 = vmul.f32 %v1153_v30, %v401_v22  ;;  %v1240_v48 = vmul.f32 %v1069_v4, %v1101_v37 }
 0x139   :  { %v431_v11 = vadd.f32 %v427_v24, %v422_v50  ;;  %v500_v51 = vadd.f32 %v496_v38, %v491_v57  ;;  %v394_v56 = vpop.permute.xlu0 %393  ;;  %v425_v60 = vmul.f32 %v1151_v32, %v404_v6  ;;  %v494_v16 = vmul.f32 %v1155_v34, %v404_v6 }
 0x13a   :  { %v403_v31 = vsel %vm89_vm0, 0.0, %v394_v56  ;;  %v576_v52 = vmul.f32 %v1153_v30, %v404_v6  ;;  %v581_v29 = vadd.f32 %v577_v5, %v573_v39 }
 0x13b   :  { %v424_v0 = vmul.f32 %v1151_v32, %v403_v31  ;;  %v493_v21 = vmul.f32 %v1155_v34, %v403_v31  ;;  %v1218_v24 = vadd.f32 %v1107_v10, %v425_v60  ;;  %v1221_v38 = vadd.f32 %v1110_v19, %v494_v16  ;;  %v408_v15 = vpop.permute.xlu1 %407 }
 0x13c   :  { %v418_v41 = vsel %vm106_vm1, %v408_v15, 0.0  ;;  %v555_v10 = vmul.f32 %v1065_v17, %v1101_v37  ;;  %v1244_v56 = vadd.f32 %v580_v43, %v576_v52  ;;  %v575_v17 = vmul.f32 %v1153_v30, %v403_v31 }
 0x13d   :  { %v1227_v26 = vadd.f32 %v1114_v14, %v424_v0  ;;  %v1230_v25 = vadd.f32 %v1117_v7, %v493_v21  ;;  %v406_v22 = vpop.permute.xlu0 %405  ;;  %v437_v19 = vmul.f32 %v1182_v12, %v418_v41  ;;  %v506_v50 = vmul.f32 %v1193_v53, %v418_v41 }
 0x13e   :  { %v417_v57 = vsel %vm106_vm1, %v406_v22, 0.0  ;;  %v582_v14 = vadd.f32 %v578_v54, %v574_v44  ;;  %v586_v21 = vmul.f32 %v1184_v40, %v418_v41  ;;  %v1262_v31 = vadd.f32 %v579_v9, %v575_v17 }
 0x13f   :  { %v436_v7 = vmul.f32 %v1182_v12, %v417_v57  ;;  %v505_v6 = vmul.f32 %v1193_v53, %v417_v57  ;;  %v441_v60 = vadd.f32 %v437_v19, %v432_v8  ;;  %v510_v16 = vadd.f32 %v506_v50, %v501_v58  ;;  %v356_v0 = vpop.permute.xlu1 %355 }
 0x140   :  { %v366_v4 = vsel %vm89_vm0, 0.0, %v356_v0  ;;  %v585_v43 = vmul.f32 %v1184_v40, %v417_v57  ;;  %v590_v9 = vadd.f32 %v586_v21, %v582_v14 }
 0x141   :  { %v440_v15 = vadd.f32 %v436_v7, %v431_v11  ;;  %v1248_v22 = vadd.f32 %v505_v6, %v500_v51  ;;  %v354_v37 = vpop.permute.xlu0 %353  ;;  %v1252_v54 = vadd.f32 %v1204_v61, %v441_v60  ;;  %v518_v5 = vrot.slane %v510_v16, 7 }
 0x142   :  { %v451_v44 = vmul.f32 %v1153_v30, %v366_v4  ;;  %v550_v11 = vmul.f32 %v1151_v32, %v366_v4  ;;  %v365_v51 = vsel %vm89_vm0, 0.0, %v354_v37  ;;  %v598_v52 = vmul.f32 %v1155_v34, %v366_v4 }
 0x143   :  { %v1257_v8 = vadd.f32 %v1204_v61, %v440_v15  ;;  %v517_v58 = vrot.slane %v1248_v22, 7  ;;  %v450_v41 = vmul.f32 %v1153_v30, %v365_v51  ;;  %v360_v19 = vpop.permute.xlu1 %359  ;;  %v549_v50 = vmul.f32 %v1151_v32, %v365_v51 }
 0x144   :  { %v460_v39 = vadd.f32 %v1051_v46, %v451_v44  ;;  %v597_v57 = vmul.f32 %v1155_v34, %v365_v51  ;;  %v368_v7 = vsel %vm89_vm0, 0.0, %v360_v19  ;;  %v589_v0 = vadd.f32 %v585_v43, %v581_v29 }
 0x145   :  { %v358_v6 = vpop.permute.xlu0 %357  ;;  %v1273_v60 = vsel %vm344_vm3, %v517_v58, %v518_v5  ;;  %v459_v46 = vadd.f32 %v1122_v13, %v450_v41  ;;  %v453_v17 = vmul.f32 %v1153_v30, %v368_v7  ;;  %v552_v16 = vmul.f32 %v1151_v32, %v368_v7 }
 0x146   :  { %v558_v15 = vadd.f32 %v1167_v36, %v550_v11  ;;  %v600_v4 = vmul.f32 %v1155_v34, %v368_v7  ;;  %v367_v37 = vsel %vm89_vm0, 0.0, %v358_v6  ;;  %v606_v44 = vadd.f32 %v1171_v1, %v598_v52 }
 0x147   :  { %v462_v51 = vadd.f32 %v1073_v42, %v453_v17  ;;  %v452_v5 = vmul.f32 %v1153_v30, %v367_v37  ;;  %v551_v14 = vmul.f32 %v1151_v32, %v367_v37  ;;  %v372_v13 = vpop.permute.xlu1 %371  ;;  %v557_v21 = vadd.f32 %v1211_v63, %v549_v50 }
 0x148   :  { %v605_v41 = vadd.f32 %v601_v3, %v597_v57  ;;  %v599_v29 = vmul.f32 %v1155_v34, %v367_v37  ;;  %v382_v36 = vsel %vm106_vm1, %v372_v13, 0.0  ;;  %v560_v11 = vadd.f32 %v1175_v23, %v552_v16 }
 0x149   :  { %v370_v43 = vpop.permute.xlu0 %369  ;;  %v461_v19 = vadd.f32 %v1126_v28, %v452_v5  ;;  %v465_v1 = vmul.f32 %v1184_v40, %v382_v36  ;;  %v562_v42 = vmul.f32 %v1182_v12, %v382_v36  ;;  %v608_v30 = vadd.f32 %v1188_v27, %v600_v4 }
 0x14a   :  { %v559_v32 = vadd.f32 %v555_v10, %v551_v14  ;;  %v610_v52 = vmul.f32 %v1193_v53, %v382_v36  ;;  %v381_v63 = vsel %vm106_vm1, %v370_v43, 0.0  ;;  %v607_v28 = vadd.f32 %v1240_v48, %v599_v29 }
 0x14b   :  { %v469_v3 = vadd.f32 %v465_v1, %v460_v39  ;;  %v566_v34 = vadd.f32 %v562_v42, %v558_v15  ;;  %v464_v50 = vmul.f32 %v1184_v40, %v381_v63  ;;  %v561_v57 = vmul.f32 %v1182_v12, %v381_v63  ;;  %v376_v23 = vpop.permute.xlu1 %375 }
 0x14c   :  { %v614_v7 = vadd.f32 %v610_v52, %v606_v44  ;;  %v609_v6 = vmul.f32 %v1193_v53, %v381_v63  ;;  %v384_v17 = vsel %vm106_vm1, %v376_v23, 0.0 }
 0x14d   :  { %v374_v27 = vpop.permute.xlu0 %373  ;;  %v477_v10 = vrot.slane %v469_v3, 7  ;;  %v570_v16 = vadd.f32 %v566_v34, %v1204_v61  ;;  %v468_v4 = vadd.f32 %v464_v50, %v459_v46  ;;  %v565_v37 = vadd.f32 %v561_v57, %v557_v21 }
 0x14e   :  { %v622_v39 = vrot.slane %v614_v7, 7  ;;  %v613_v15 = vadd.f32 %v609_v6, %v605_v41  ;;  %v467_v5 = vmul.f32 %v1184_v40, %v384_v17  ;;  %v564_v14 = vmul.f32 %v1182_v12, %v384_v17 }
 0x14f   :  { %v594_v13 = vadd.f32 %v590_v9, %v570_v16  ;;  %v476_v36 = vrot.slane %v468_v4, 7  ;;  %v569_v48 = vadd.f32 %v565_v37, %v1204_v61  ;;  %v612_v44 = vmul.f32 %v1193_v53, %v384_v17  ;;  %v412_v63 = vpop.permute.xlu1 %411 }
 0x150   :  { %v621_v29 = vrot.slane %v613_v15, 7  ;;  %v471_v43 = vadd.f32 %v467_v5, %v462_v51  ;;  %v568_v1 = vadd.f32 %v564_v14, %v560_v11  ;;  %v383_v42 = vsel %vm106_vm1, %v374_v27, 0.0 }
 0x151   :  { %v478_v46 = vsel %vm344_vm3, %v476_v36, %v477_v10  ;;  %v486_v21 = vadd.f32 %v476_v36, %v1257_v8  ;;  %v593_v41 = vadd.f32 %v589_v0, %v569_v48  ;;  %v616_v52 = vadd.f32 %v612_v44, %v608_v30  ;;  %v410_v3 = vpop.permute.xlu0 %409 }
 0x152   :  { %v623_v9 = vsel %vm344_vm3, %v621_v29, %v622_v39  ;;  %v480_v34 = vrot.slane %v471_v43, 7  ;;  %v572_v50 = vadd.f32 %v568_v1, %v1204_v61  ;;  %v466_v57 = vmul.f32 %v1184_v40, %v383_v42 }
 0x153   :  { %v631_v23 = vadd.f32 %v621_v29, %v593_v41  ;;  %v632_v51 = vadd.f32 %v623_v9, %v594_v13  ;;  %v625_v11 = vrot.slane %v616_v52, 7  ;;  %v563_v7 = vmul.f32 %v1182_v12, %v383_v42 }
 0x154   :  { %v470_v6 = vadd.f32 %v466_v57, %v461_v19  ;;  %v611_v17 = vmul.f32 %v1193_v53, %v383_v42  ;;  %v420_v8 = vsel %vm106_vm1, %v412_v63, 0.0  ;;  %v419_v0 = vsel %vm106_vm1, %v410_v3, 0.0 }
 0x155   :  { %v567_v30 = vadd.f32 %v563_v7, %v559_v32  ;;  %v439_v27 = vmul.f32 %v1182_v12, %v420_v8  ;;  %v508_v10 = vmul.f32 %v1193_v53, %v420_v8  ;;  %v588_v16 = vmul.f32 %v1184_v40, %v420_v8 }
 0x156   :  { %v479_v4 = vrot.slane %v470_v6, 7  ;;  %v615_v37 = vadd.f32 %v611_v17, %v607_v28  ;;  %v438_v39 = vmul.f32 %v1182_v12, %v419_v0  ;;  %v507_v15 = vmul.f32 %v1193_v53, %v419_v0 }
 0x157   :  { %v571_v19 = vadd.f32 %v567_v30, %v1204_v61  ;;  %v443_v5 = vadd.f32 %v439_v27, %v1218_v24  ;;  %v512_v14 = vadd.f32 %v508_v10, %v1221_v38  ;;  %v592_v32 = vadd.f32 %v588_v16, %v1244_v56 }
 0x158   :  { %v624_v13 = vrot.slane %v615_v37, 7  ;;  %v481_v36 = vsel %vm344_vm3, %v479_v4, %v480_v34  ;;  %v442_v48 = vadd.f32 %v438_v39, %v1227_v26  ;;  %v511_v44 = vadd.f32 %v507_v15, %v1230_v25 }
 0x159   :  { %v448_v28 = vadd.f32 %v1204_v61, %v443_v5  ;;  %v521_v12 = vrot.slane %v512_v14, 7  ;;  %v596_v29 = vadd.f32 %v592_v32, %v572_v50  ;;  %v587_v53 = vmul.f32 %v1184_v40, %v419_v0 }
 0x15a   :  { %v626_v43 = vsel %vm344_vm3, %v624_v13, %v625_v11  ;;  %v447_v24 = vadd.f32 %v1204_v61, %v442_v48  ;;  %v520_v38 = vrot.slane %v511_v44, 7  ;;  %v635_v56 = vadd.f32 %v631_v23, %v1159_v35 }
 0x15b   :  { %v489_v1 = vadd.f32 %v481_v36, %v448_v28  ;;  %v634_v42 = vadd.f32 %v626_v43, %v596_v29  ;;  %v591_v41 = vadd.f32 %v587_v53, %v1262_v31  ;;  %v636_v26 = vadd.f32 %v632_v51, %v1163_v33 }
 0x15c   :  { %v488_v25 = vadd.f32 %v479_v4, %v447_v24  ;;  %v643_v52 = vrot.slane %v635_v56, 1  ;;  %v527_v63 = vadd.f32 %v517_v58, %v486_v21  ;;  %v487_v61 = vadd.f32 %v478_v46, %v1252_v54 }
 0x15d   :  { %v595_v40 = vadd.f32 %v591_v41, %v571_v19  ;;  %v644_v3 = vrot.slane %v636_v26, 1  ;;  %v638_v9 = vadd.f32 %v634_v42, %v1179_v59  ;;  %v302_v35 = vadd.f32 %v1033_v62, %v901_v55 }
 0x15e   :  { %v529_v34 = vadd.f32 %v520_v38, %v488_v25  ;;  %v545_v31 = vadd.f32 %v535_v45, %v527_v63  ;;  %v522_v33 = vsel %vm344_vm3, %v520_v38, %v521_v12  ;;  %v528_v59 = vadd.f32 %v1273_v60, %v487_v61 }
 0x15f   :  { %v633_v50 = vadd.f32 %v624_v13, %v595_v40  ;;  %v645_v57 = vsel %vm166_vm2, %v643_v52, %v644_v3  ;;  %v652_v22 = vsel %vm651_vm4, %v644_v3, 0.0  ;;  %v647_v58 = vrot.slane %v638_v9, 1 }
 0x160   :  { %v656_v21 = vrot.slane %v645_v57, 7  ;;  %v657_v23 = vrot.slane %v652_v22, 7  ;;  %v547_v54 = vadd.f32 %v538_v49, %v529_v34  ;;  %v530_v62 = vadd.f32 %v522_v33, %v489_v1 }
 0x161   :  { %v637_v46 = vadd.f32 %v633_v50, %v302_v35  ;;  %v653_v55 = vsel %vm651_vm4, %v647_v58, 0.0  ;;  %v546_v45 = vadd.f32 %v1079_v47, %v528_v59 }
 0x162   :  { %662 = vrot.lane.b32.xlu0 %v656_v21, %s772_s29  ;;  %v658_v20 = vsel %vm344_vm3, %v656_v21, %v657_v23  ;;  %v548_v11 = vadd.f32 %v1087_v2, %v530_v62  ;;  %v660_v7 = vrot.slane %v653_v55, 7 }
 0x163   :  { %664 = vrot.lane.b32.xlu1 %v658_v20, %s772_s29  ;;  %v646_v51 = vrot.slane %v637_v46, 1 }
 0x165   :  { %v648_v60 = vsel %vm166_vm2, %v646_v51, %v647_v58 }
 0x166   :  { %v659_v6 = vrot.slane %v648_v60, 7 }
 0x168   :  { %666 = vrot.lane.b32.xlu0 %v659_v6, %s772_s29  ;;  %v661_v18 = vsel %vm344_vm3, %v659_v6, %v660_v7 }
 0x169   :  { %668 = vrot.lane.b32.xlu1 %v661_v18, %s772_s29 }
 0x1d4   :  { %v663_v49 = vpop.permute.xlu0 %662 }
 0x1d5   :  { %v675_v17 = vsel %vm674_vm5, %v545_v31, %v663_v49  ;;  %v665_v8 = vpop.permute.xlu1 %664 }
 0x1d6   :  { %680 = vst.msk [vmem:[%s1369_s3 - $0x1] sm:$0xfe] %vm679_vm6, %v675_v17  ;;  %v676_v47 = vsel %vm674_vm5, %v546_v45, %v665_v8 }
 0x1d7   :  { %682 = vst.msk [vmem:[%s1369_s3 + $0x7] sm:$0xff] %vm681_vm7, %v676_v47 }
 0x1da   :  { %v667_v2 = vpop.permute.xlu0 %666 }
 0x1db   :  { %v677_v0 = vsel %vm674_vm5, %v547_v54, %v667_v2  ;;  %v669_v30 = vpop.permute.xlu1 %668 }
 0x1dc   :  { %683 = vst.msk [vmem:[%s1369_s3 + $0xf] sm:$0xfe] %vm679_vm6, %v677_v0  ;;  %v678_v27 = vsel %vm674_vm5, %v548_v11, %v669_v30 }
 0x1dd   :  { %684 = vst.msk [vmem:[%s1369_s3 + $0x17] sm:$0xff] %vm681_vm7, %v678_v27 }
 0x1de   :  { %689 = vsyncpa [#allocation3], 1 }
 0x1df   :  { %690 = vsyncpa [#allocation5], 1 }

</bundles_post_ra>
